<compile_context>
chip_gen: v7x
topology: tpu7x:2x2x1
jax: 0.10.0
libtpu: 0.0.40
codegen_flags: <defaults>
</compile_context>

<pallas_src>
import functools

import jax
import jax.numpy as jnp
from jax.experimental import pallas as pl
from jax.experimental.pallas import tpu as pltpu

_MiB = 1024 * 1024


def _vmem_budget_and_limit():
    """Generation-aware VMEM working-set budget and explicit scoped limit."""
    try:
        cap = int(pltpu.get_tpu_info().vmem_capacity_bytes)
    except Exception:
        cap = 64 * _MiB                       # conservative (v7x per-TC size)
    budget = min(24 * _MiB, cap // 3)         # tiling working-set budget
    limit = min(cap, budget + 16 * _MiB)      # explicit scoped-VMEM limit
    return budget, limit


def _pick_tile_hw(num_classes, hw, budget_bytes):
    """Largest lane-aligned HW tile whose working set fits the VMEM budget."""
    c_pad = max(8, ((num_classes + 7) // 8) * 8)   # f32 sublane padding
    per_lane = (
        2 * c_pad * 4      # double-buffered logits block (f32 worst case)
        + 2 * 8 * 4        # double-buffered labels block (1 row -> 8 sublanes)
        + 2 * c_pad * 4    # two f32 accumulators (intersection, union)
    )
    tile = budget_bytes // per_lane
    tile = max(128, (tile // 128) * 128)
    tile = min(tile, max(128, pl.cdiv(hw, 128) * 128))
    return int(tile)


def _dice_sums_kernel(x_ref, lab_ref, out_ref, acc_inter, acc_union,
                      *, num_classes, last_tile_valid):
    """Accumulate per-class [intersection, union] for one (batch, split)."""
    j = pl.program_id(2)
    last_j = pl.num_programs(2) - 1

    # Zero the per-class, full-tile-width accumulators on the first HW tile.
    @pl.when(j == 0)
    def _():
        acc_inter[...] = jnp.zeros_like(acc_inter)
        acc_union[...] = jnp.zeros_like(acc_union)

    # Softmax over the class (sublane) axis; cast to f32 inside VMEM so bf16
    # inputs stream from HBM at bf16 width.
    x = x_ref[...].astype(jnp.float32)                    # (C, T)
    m = jnp.max(x, axis=0, keepdims=True)                 # (1, T)
    e = jnp.exp(x - m)                                    # EUP
    denom = jnp.sum(e, axis=0, keepdims=True)             # (1, T)
    probs = e * pl.reciprocal(denom, approx=False)        # (C, T), VPU muls

    labels = lab_ref[...]                                 # (1, T) int32
    class_ids = jax.lax.broadcasted_iota(jnp.int32, (num_classes, 1), 0)

    def accumulate(lab, prob):
        eq = lab == class_ids                             # (C, T) one-hot bool
        # Pure elementwise VPU accumulation — no cross-lane reduce here.
        acc_inter[...] += jnp.where(eq, prob, 0.0)
        # union = prob_sum + label_sum folded into ONE accumulator.
        acc_union[...] += prob + jnp.where(eq, 1.0, 0.0)

    if last_tile_valid is None:
        accumulate(labels, probs)
    else:
        is_last = jnp.logical_and(
            pl.program_id(1) == pl.num_programs(1) - 1, j == last_j)

        @pl.when(jnp.logical_not(is_last))
        def _():
            accumulate(labels, probs)

        @pl.when(is_last)
        def _():
            # Ragged tail: mask invalid lanes (labels -> -1 never matches a
            # class; probs -> 0 so garbage/NaN in the OOB region cannot leak).
            lane = jax.lax.broadcasted_iota(jnp.int32, labels.shape, 1)
            valid = lane < last_tile_valid
            accumulate(jnp.where(valid, labels, -1),
                       jnp.where(valid, probs, 0.0))

    # Finalize: single 128->1 lane reduction per (batch, split), written once.
    @pl.when(j == last_j)
    def _():
        inter = jnp.sum(acc_inter[...], axis=1, keepdims=True)   # (C, 1)
        union = jnp.sum(acc_union[...], axis=1, keepdims=True)   # (C, 1)
        out_ref[...] = jnp.concatenate([inter, union], axis=1)   # (C, 2)


def dice_loss(logits, labels, *, smooth=1e-6, class_weights=None, tile_hw=None):
    """logits: (N, C, H, W), labels: (N, H, W) int -> scalar f32 Dice loss."""
    N, C, H, W = logits.shape
    assert labels.shape == (N, H, W)
    HW = H * W

    budget, vmem_limit = _vmem_budget_and_limit()
    if tile_hw is None:
        tile_hw = _pick_tile_hw(C, HW, budget)
    assert tile_hw % 128 == 0

    num_tiles = pl.cdiv(HW, tile_hw)
    rem = HW - (num_tiles - 1) * tile_hw
    last_tile_valid = None if rem == tile_hw else int(rem)

    # Give v7x's second TensorCore work when N == 1 by splitting the HW tiles
    # into a second "parallel" grid axis (no effect on v5e/v6e).
    if N == 1 and num_tiles >= 2 and num_tiles % 2 == 0:
        num_splits = 2
    else:
        num_splits = 1
    tiles_per_split = num_tiles // num_splits

    # Free views — no transpose, no host-side padding, no dtype up-cast.
    x3 = logits.reshape(N, C, HW)
    lab3 = labels.reshape(N, 1, HW).astype(jnp.int32)

    kernel = functools.partial(_dice_sums_kernel, num_classes=C,
                               last_tile_valid=last_tile_valid)

    # Per-(batch, split) per-class sums: [intersection, union].
    sums = pl.pallas_call(
        kernel,
        out_shape=jax.ShapeDtypeStruct((N, num_splits, C, 2), jnp.float32),
        grid_spec=pltpu.PrefetchScalarGridSpec(
            num_scalar_prefetch=0,
            grid=(N, num_splits, tiles_per_split),
            in_specs=[
                pl.BlockSpec((None, C, tile_hw),
                             lambda n, s, j: (n, 0, s * tiles_per_split + j)),
                pl.BlockSpec((None, 1, tile_hw),
                             lambda n, s, j: (n, 0, s * tiles_per_split + j)),
            ],
            out_specs=pl.BlockSpec((None, None, C, 2),
                                   lambda n, s, j: (n, s, 0, 0)),
            scratch_shapes=[
                pltpu.VMEM((C, tile_hw), jnp.float32),   # intersection partials
                pltpu.VMEM((C, tile_hw), jnp.float32),   # union partials
            ],
        ),
        compiler_params=pltpu.CompilerParams(
            dimension_semantics=("parallel", "parallel", "arbitrary"),
            vmem_limit_bytes=int(vmem_limit)),
    )(x3, lab3)

    # Tiny scalar epilogue in plain JAX (dice formula + class weights).
    tot = jnp.sum(sums, axis=(0, 1))                      # (C, 2)
    inter, union = tot[:, 0], tot[:, 1]
    dice = (2.0 * inter + smooth) / (union + smooth)
    dl = 1.0 - dice
    if class_weights is not None:
        dl = dl * jnp.asarray(class_weights, jnp.float32)
    return jnp.sum(dl) / C


def _dice_loss_ref(logits, labels, smooth=1e-6, class_weights=None):
    """Pure-JAX reference mirroring the PyTorch forward."""
    probs = jax.nn.softmax(logits.astype(jnp.float32), axis=1)
    num_classes = probs.shape[1]
    total = 0.0
    for i in range(num_classes):
        cp = probs[:, i]
        cl = (labels == i).astype(jnp.float32)
        inter = jnp.sum(cp * cl)
        union = jnp.sum(cp) + jnp.sum(cl)
        dice = (2.0 * inter + smooth) / (union + smooth)
        dl = 1.0 - dice
        if class_weights is not None:
            dl = dl * class_weights[i]
        total = total + dl
    return total / num_classes


if __name__ == "__main__":
    key = jax.random.PRNGKey(0)
    k1, k2, k3, k4, k5, k6, k7, k8 = jax.random.split(key, 8)

    # Case 1: default DiceLoss(smooth=1e-6), tile-aligned HW.
    N, C, H, W = 2, 4, 16, 16
    logits = jax.random.normal(k1, (N, C, H, W), dtype=jnp.float32)
    labels = jax.random.randint(k2, (N, H, W), 0, C, dtype=jnp.int32)
    loss = jax.block_until_ready(dice_loss(logits, labels))
    ref = _dice_loss_ref(logits, labels)
    assert jnp.allclose(loss, ref, rtol=1e-5, atol=1e-5), (loss, ref)

    # Case 2: ragged HW (masked last tile handled in-kernel) + class weights.
    w2 = jnp.asarray([0.2, 0.3, 0.5], jnp.float32)
    logits2 = jax.random.normal(k3, (2, 3, 10, 10), dtype=jnp.float32)
    labels2 = jax.random.randint(k4, (2, 10, 10), 0, 3, dtype=jnp.int32)
    loss2 = jax.block_until_ready(dice_loss(logits2, labels2, class_weights=w2))
    ref2 = _dice_loss_ref(logits2, labels2, class_weights=w2)
    assert jnp.allclose(loss2, ref2, rtol=1e-5, atol=1e-5), (loss2, ref2)

    # Case 3: N == 1, multiple tiles -> exercises the parallel HW split (S=2).
    logits3 = jax.random.normal(k5, (1, 3, 16, 32), dtype=jnp.float32)
    labels3 = jax.random.randint(k6, (1, 16, 32), 0, 3, dtype=jnp.int32)
    loss3 = jax.block_until_ready(dice_loss(logits3, labels3, tile_hw=128))
    ref3 = _dice_loss_ref(logits3, labels3)
    assert jnp.allclose(loss3, ref3, rtol=1e-5, atol=1e-5), (loss3, ref3)

    # Case 4: multi-tile reduction + ragged last tile + class weights.
    w4 = jnp.asarray([1.0, 0.5, 2.0, 0.25, 1.5], jnp.float32)
    logits4 = jax.random.normal(k7, (2, 5, 13, 17), dtype=jnp.float32)
    labels4 = jax.random.randint(k8, (2, 13, 17), 0, 5, dtype=jnp.int32)
    loss4 = jax.block_until_ready(
        dice_loss(logits4, labels4, class_weights=w4, tile_hw=128))
    ref4 = _dice_loss_ref(logits4, labels4, class_weights=w4)
    assert jnp.allclose(loss4, ref4, rtol=1e-5, atol=1e-5), (loss4, ref4)

    print("KERNEL_OK")
</pallas_src>

<mosaic_0001>
module attributes {stable_mosaic.version = 11 : i64} {
  func.func @_dice_sums_kernel(%arg0: i32, %arg1: i32, %arg2: i32, %arg3: memref<1x4x256xf32, #tpu.memory_space<vmem>>, %arg4: memref<1x1x256xi32, #tpu.memory_space<vmem>>, %arg5: memref<1x1x4x2xf32, #tpu.memory_space<vmem>>, %arg6: memref<4x256xf32, #tpu.memory_space<vmem>>, %arg7: memref<4x256xf32, #tpu.memory_space<vmem>>) attributes {dimension_semantics = [#tpu.dimension_semantics<parallel>, #tpu.dimension_semantics<parallel>, #tpu.dimension_semantics<arbitrary>], iteration_bounds = array<i64: 2, 1, 1>, scalar_prefetch = 0 : i64, scratch_operands = 2 : i64, tpu.core_type = #tpu.core_type<tc>, window_params = [{transform_indices = @transform_0, window_bounds = array<i64: 1, 4, 256>}, {transform_indices = @transform_1, window_bounds = array<i64: 1, 1, 256>}, {transform_indices = @transform_2, window_bounds = array<i64: 1, 1, 4, 2>}]} {
    %c0_i32 = arith.constant 0 : i32
    %0 = arith.cmpi eq, %arg2, %c0_i32 : i32
    %1 = arith.extui %0 : i1 to i32
    %c0_i32_0 = arith.constant 0 : i32
    %2 = arith.cmpi ne, %1, %c0_i32_0 : i32
    scf.if %2 {
      %cst_20 = arith.constant 0.000000e+00 : f32
      %36 = vector.broadcast %cst_20 : f32 to vector<4x256xf32>
      %c0_21 = arith.constant 0 : index
      %c0_22 = arith.constant 0 : index
      %37 = vector.load %arg6[%c0_21, %c0_22] : memref<4x256xf32, #tpu.memory_space<vmem>>, vector<4x256xf32>
      tpu.vector_store %arg6[%c0_21, %c0_22], %36 {strides = array<i32>} : memref<4x256xf32, #tpu.memory_space<vmem>>, vector<4x256xf32>,
      %cst_23 = arith.constant 0.000000e+00 : f32
      %38 = vector.broadcast %cst_23 : f32 to vector<4x256xf32>
      %c0_24 = arith.constant 0 : index
      %c0_25 = arith.constant 0 : index
      %39 = vector.load %arg7[%c0_24, %c0_25] : memref<4x256xf32, #tpu.memory_space<vmem>>, vector<4x256xf32>
      tpu.vector_store %arg7[%c0_24, %c0_25], %38 {strides = array<i32>} : memref<4x256xf32, #tpu.memory_space<vmem>>, vector<4x256xf32>,
    } else {
    }
    %c0 = arith.constant 0 : index
    %c0_1 = arith.constant 0 : index
    %c0_2 = arith.constant 0 : index
    %3 = vector.load %arg3[%c0, %c0_1, %c0_2] : memref<1x4x256xf32, #tpu.memory_space<vmem>>, vector<1x4x256xf32>
    %4 = vector.shape_cast %3 : vector<1x4x256xf32> to vector<4x256xf32>
    %cst = arith.constant dense<0xFF800000> : vector<256xf32>
    %5 = vector.multi_reduction <maximumf>, %4, %cst [0] : vector<4x256xf32> to vector<256xf32>
    %6 = vector.shape_cast %5 : vector<256xf32> to vector<1x256xf32>
    %7 = vector.broadcast %6 : vector<1x256xf32> to vector<4x256xf32>
    %8 = arith.subf %4, %7 : vector<4x256xf32>
    %9 = math.exp %8 : vector<4x256xf32>
    %cst_3 = arith.constant dense<0.000000e+00> : vector<256xf32>
    %10 = vector.multi_reduction <add>, %9, %cst_3 [0] : vector<4x256xf32> to vector<256xf32>
    %11 = vector.shape_cast %10 : vector<256xf32> to vector<1x256xf32>
    %12 = tpu.reciprocal %11 : vector<1x256xf32> -> vector<1x256xf32>
    %13 = vector.broadcast %12 : vector<1x256xf32> to vector<4x256xf32>
    %14 = arith.mulf %9, %13 : vector<4x256xf32>
    %c0_4 = arith.constant 0 : index
    %c0_5 = arith.constant 0 : index
    %c0_6 = arith.constant 0 : index
    %15 = vector.load %arg4[%c0_4, %c0_5, %c0_6] : memref<1x1x256xi32, #tpu.memory_space<vmem>>, vector<1x1x256xi32>
    %16 = vector.shape_cast %15 : vector<1x1x256xi32> to vector<1x256xi32>
    %17 = tpu.iota {dimensions = array<i32: 0>} : vector<4x1xi32>
    %18 = vector.broadcast %16 : vector<1x256xi32> to vector<4x256xi32>
    %19 = vector.broadcast %17 : vector<4x1xi32> to vector<4x256xi32>
    %20 = arith.cmpi eq, %18, %19 : vector<4x256xi32>
    %c0_7 = arith.constant 0 : index
    %c0_8 = arith.constant 0 : index
    %21 = vector.load %arg6[%c0_7, %c0_8] : memref<4x256xf32, #tpu.memory_space<vmem>>, vector<4x256xf32>
    %cst_9 = arith.constant 0.000000e+00 : f32
    %22 = vector.broadcast %cst_9 : f32 to vector<4x256xf32>
    %23 = arith.select %20, %14, %22 : vector<4x256xi1>, vector<4x256xf32>
    %24 = arith.addf %21, %23 : vector<4x256xf32>
    %c0_10 = arith.constant 0 : index
    %c0_11 = arith.constant 0 : index
    %25 = vector.load %arg6[%c0_10, %c0_11] : memref<4x256xf32, #tpu.memory_space<vmem>>, vector<4x256xf32>
    tpu.vector_store %arg6[%c0_10, %c0_11], %24 {strides = array<i32>} : memref<4x256xf32, #tpu.memory_space<vmem>>, vector<4x256xf32>,
    %c0_12 = arith.constant 0 : index
    %c0_13 = arith.constant 0 : index
    %26 = vector.load %arg7[%c0_12, %c0_13] : memref<4x256xf32, #tpu.memory_space<vmem>>, vector<4x256xf32>
    %cst_14 = arith.constant 1.000000e+00 : f32
    %cst_15 = arith.constant 0.000000e+00 : f32
    %27 = vector.broadcast %cst_14 : f32 to vector<4x256xf32>
    %28 = vector.broadcast %cst_15 : f32 to vector<4x256xf32>
    %29 = arith.select %20, %27, %28 : vector<4x256xi1>, vector<4x256xf32>
    %30 = arith.addf %14, %29 : vector<4x256xf32>
    %31 = arith.addf %26, %30 : vector<4x256xf32>
    %c0_16 = arith.constant 0 : index
    %c0_17 = arith.constant 0 : index
    %32 = vector.load %arg7[%c0_16, %c0_17] : memref<4x256xf32, #tpu.memory_space<vmem>>, vector<4x256xf32>
    tpu.vector_store %arg7[%c0_16, %c0_17], %31 {strides = array<i32>} : memref<4x256xf32, #tpu.memory_space<vmem>>, vector<4x256xf32>,
    %c0_i32_18 = arith.constant 0 : i32
    %33 = arith.cmpi eq, %arg2, %c0_i32_18 : i32
    %34 = arith.extui %33 : i1 to i32
    %c0_i32_19 = arith.constant 0 : i32
    %35 = arith.cmpi ne, %34, %c0_i32_19 : i32
    scf.if %35 {
      %c0_20 = arith.constant 0 : index
      %c0_21 = arith.constant 0 : index
      %36 = vector.load %arg6[%c0_20, %c0_21] : memref<4x256xf32, #tpu.memory_space<vmem>>, vector<4x256xf32>
      %cst_22 = arith.constant dense<0.000000e+00> : vector<4xf32>
      %37 = vector.multi_reduction <add>, %36, %cst_22 [1] : vector<4x256xf32> to vector<4xf32>
      %38 = vector.shape_cast %37 : vector<4xf32> to vector<4x1xf32>
      %c0_23 = arith.constant 0 : index
      %c0_24 = arith.constant 0 : index
      %39 = vector.load %arg7[%c0_23, %c0_24] : memref<4x256xf32, #tpu.memory_space<vmem>>, vector<4x256xf32>
      %cst_25 = arith.constant dense<0.000000e+00> : vector<4xf32>
      %40 = vector.multi_reduction <add>, %39, %cst_25 [1] : vector<4x256xf32> to vector<4xf32>
      %41 = vector.shape_cast %40 : vector<4xf32> to vector<4x1xf32>
      %42 = tpu.concatenate %38, %41 in 1 : vector<4x1xf32>, vector<4x1xf32> -> vector<4x2xf32>
      %c0_26 = arith.constant 0 : index
      %c0_27 = arith.constant 0 : index
      %c0_28 = arith.constant 0 : index
      %c0_29 = arith.constant 0 : index
      %43 = vector.load %arg5[%c0_26, %c0_27, %c0_28, %c0_29] : memref<1x1x4x2xf32, #tpu.memory_space<vmem>>, vector<1x1x4x2xf32>
      %44 = vector.shape_cast %43 : vector<1x1x4x2xf32> to vector<4x2xf32>
      %45 = vector.shape_cast %42 : vector<4x2xf32> to vector<1x1x4x2xf32>
      tpu.vector_store %arg5[%c0_26, %c0_27, %c0_28, %c0_29], %45 {strides = array<i32>} : memref<1x1x4x2xf32, #tpu.memory_space<vmem>>, vector<1x1x4x2xf32>,
    } else {
    }
    return
  }
  func.func @transform_0(%arg0: i32, %arg1: i32, %arg2: i32) -> (i32, i32, i32) {
    %c1_i32 = arith.constant 1 : i32
    %0 = arith.muli %arg1, %c1_i32 : i32
    %1 = arith.addi %0, %arg2 : i32
    %c0_i32 = arith.constant 0 : i32
    %c0_i32_0 = arith.constant 0 : i32
    return %arg0, %c0_i32, %1 : i32, i32, i32
  }
  func.func @transform_1(%arg0: i32, %arg1: i32, %arg2: i32) -> (i32, i32, i32) {
    %c1_i32 = arith.constant 1 : i32
    %0 = arith.muli %arg1, %c1_i32 : i32
    %1 = arith.addi %0, %arg2 : i32
    %c0_i32 = arith.constant 0 : i32
    %c0_i32_0 = arith.constant 0 : i32
    return %arg0, %c0_i32, %1 : i32, i32, i32
  }
  func.func @transform_2(%arg0: i32, %arg1: i32, %arg2: i32) -> (i32, i32, i32, i32) {
    %c0_i32 = arith.constant 0 : i32
    %c0_i32_0 = arith.constant 0 : i32
    %c0_i32_1 = arith.constant 0 : i32
    return %arg0, %arg1, %c0_i32, %c0_i32_0 : i32, i32, i32, i32
  }
}

</mosaic_0001>

<bundles_post_ra>
// kernel: tpu_custom_call.1
= control target key start
LH: loop header
LB: loop body
LE: loop exit
PB: predicated region body
PF: predicated region fallthrough
CT: control target
= control target key end

     0   :  { %7 = vsyncpa [#allocation5], 0  ;;  %s874_s0 = inlined_call_operand.hbm [shape: f32[2,4,256], index: 0, kind: input, shape index: {}]   ;;  %s875_s1 = inlined_call_operand.hbm [shape: s32[2,1,256], index: 1, kind: input, shape index: {}]   ;;  %s876_s2 = inlined_call_operand.vmem [shape: f32[2,1,4,2], index: 2, kind: output, shape index: {}]  }
   0x1   :  { %9 = vsyncpa [#allocation5 + $0x1], 0 }
   0x2   :  { %10 = vsyncpa [#allocation7], 0 }
   0x3   :  { %12 = vsyncpa [#allocation7 + $0x1], 0  ;;  %s697_s9 = smov 0   ;;  %s699_s10 = smov 0  }
   0x4   :  { %s701_s11 = smov 0   ;;  %s703_s12 = smov 0  }
   0x5   :  { %s705_s13 = smov 0   ;;  %s707_s14 = smov 0  }
   0x6 LB: > { %s476_s15 = sadd.s32 4294967295, %s677_s14   ;;  %s37_s16 = sadd.s32 1, %s673_s13  ;;  %s677_s14 = sphi %s707_s14, %s18_s14   ;;  %s673_s13 = sphi %s705_s13, %s890_s13   ;;  %s669_s12 = sphi %s703_s12, %s889_s12   ;;  %s665_s11 = sphi %s701_s11, %s888_s11   ;;  %s661_s10 = sphi %s699_s10, %s887_s10   ;;  %s657_s9 = sphi %s697_s9, %s886_s9  }
   0x7   : > { %p39_p0 = scmp.ge.s32.totalorder %s37_s16, 2  ;;  %s48_s17 = sadd.s32 1, %s665_s11 }
   0x8   : > { %p55_p1 = scmp.ne.s32.totalorder %s665_s11, %s661_s10  ;;  %p56_p2 = scmp.eq.s32.totalorder %s677_s14, 0 }
   0x9   : > { %s892_s16 = smov (%p39_p0, %s37_s16), 0  ;;  %p61_p4 = scmp.ne.s32.totalorder %s661_s10, %s657_s9 }
   0xa   : > { %p733_p3 = por %p56_p2, %p55_p1  ;;  %s43_s19 = ssub.s32 %s673_s13, %s892_s16 }
   0xb   : > { %p62_p5 = scmp.eq.s32.totalorder %s476_s15, 0  ;;  %p46_p6 = scmp.eq.s32.totalorder %s43_s19, 0 }
   0xc   : > { %p506_p8 = scmp.lt.s32.totalorder %s677_s14, 2  ;;  %s749_s22 = sand.u32 1, %s665_s11  }
   0xd   : > { %p740_p7 = por %p62_p5, %p61_p4  ;;  %s492_s23 = sshll.u32 %s673_s13, 7 }
   0xe   : > { %s746_s21 = scalar_select %p46_p6, %s665_s11, %s48_s17  }
   0xf   : > { %s879_s20 = scalar_select %p740_p7, 1, 0 }
  0x10   : > { %s480_s24 = sshll.u32 %s749_s22, 3  ;;  %s756_s27 = scalar_lea.hbm %s874_s0, %s492_s23 }
  0x11   : > { %s147_s28 = scalar_lea.vmem [#allocation4], %s480_s24  ;;  %p760_p9 = pnand %p506_p8, %p733_p3 }
  0x12   : > { %s158_s29 = sshll.u32 %s147_s28, 4  ;;  %s144_s3 = scalar_lea.sflag [#allocation5], %s749_s22  ;;  %s764_s29 = int_to_ptr.vmem [resolvable:$true] %s158_s29 }
  0x13   : > { %s563_s4 = scalar_lea.hbm %s756_s27, 128  ;;  %p565_p13 = pneg %p760_p9 }
  0x14   : > { %p564_p12 = scmp.ne.s32.totalorder %s756_s27, %s563_s4  ;;  %s568_s7 = scalar_lea.hbm %s874_s0, 256 }
  0x15   : > { %p569_p2 = scmp.lt.u32.totalorder %s756_s27, %s874_s0  ;;  %p570_p3 = scmp.lt.u32.totalorder %s568_s7, %s563_s4 }
  0x16   : > { %p566_p0 = pnand %p565_p13, %p564_p12  ;;  %p572_p5 = scmp.lt.u32.totalorder %s563_s4, %s756_s27 }
  0x17   : > { %p571_p4 = por %p570_p3, %p569_p2 }
  0x18   : > { %p567_p1 = pneg %p566_p0 }
  0x19   : > { %p573_p6 = por %p572_p5, %p571_p4 }
  0x1b   : > { %p574_p8 = pnand %p573_p6, %p567_p1 }
  0x1d   : > { %577 = shalt.err (!%p574_p8)
}
  0x1e   : > { %s578_s15 = scalar_lea.vmem %s764_s29, 128  ;;  %s679_s17 = smov [#allocation4]  }
  0x1f   : > { %p579_p12 = scmp.ne.s32.totalorder %s764_s29, %s578_s15  ;;  %s583_s18 = sshll.u32 %s679_s17, 4  ;;  %s584_s18 = int_to_ptr.vmem [resolvable:$false] %s583_s18 }
  0x20   : > { %s585_s19 = scalar_lea.vmem %s584_s18, 256  ;;  %p586_p11 = scmp.lt.s32.totalorder %s764_s29, %s584_s18 }
  0x21   : > { %p581_p0 = pnand %p579_p12, %p565_p13  ;;  %p587_p2 = scmp.lt.s32.totalorder %s585_s19, %s578_s15 }
  0x23   : > { %p582_p10 = pneg %p581_p0  ;;  %p588_p3 = por %p587_p2, %p586_p11 }
  0x25   : > { %p589_p4 = pnand %p588_p3, %p582_p10 }
  0x27   : > { %592 = shalt.err (!%p589_p4)
}
  0x28   : > { %502 = dma.hbm_to_vmem [thread:$0]  (!%p760_p9), %s756_s27, 128, %s764_s29, %s144_s3  }
  0x29   : > { %p881_p1 = scmp.lt.s32.totalorder %s677_s14, 3  ;;  %p882_p5 = scmp.ge.s32.totalorder %s677_s14, 1 }
  0x2a   : > { %s483_s24 = sshll.u32 %s749_s22, 1  ;;  %s493_s25 = sshll.u32 %s673_s13, 5 }
  0x2b   : > { %p798_p6 = pnand %p882_p5, %p881_p1  ;;  %s807_s4 = scalar_lea.hbm %s875_s1, %s493_s25 }
  0x2c   : > { %s169_s5 = scalar_lea.vmem [#allocation6], %s483_s24  ;;  %s166_s27 = scalar_lea.sflag [#allocation7], %s749_s22 }
  0x2d   : > { %s883_s23 = scalar_select %p798_p6, 1, 0 }
  0x2e   : > { %s180_s6 = sshll.u32 %s169_s5, 4  ;;  %s593_s29 = scalar_lea.hbm %s807_s4, 32  ;;  %s181_s6 = int_to_ptr.vmem [resolvable:$true] %s180_s6 }
  0x2f   : > { %p594_p10 = scmp.ne.s32.totalorder %s807_s4, %s593_s29  ;;  %s598_s8 = scalar_lea.hbm %s875_s1, 64 }
  0x30   : > { %p599_p12 = scmp.lt.u32.totalorder %s807_s4, %s875_s1  ;;  %p600_p0 = scmp.lt.u32.totalorder %s598_s8, %s593_s29 }
  0x31   : > { %p596_p11 = pnand %p594_p10, %p565_p13  ;;  %p602_p3 = scmp.lt.u32.totalorder %s593_s29, %s807_s4 }
  0x32   : > { %p601_p2 = por %p600_p0, %p599_p12 }
  0x33   : > { %p597_p8 = pneg %p596_p11 }
  0x34   : > { %p603_p4 = por %p602_p3, %p601_p2 }
  0x36   : > { %p604_p1 = pnand %p603_p4, %p597_p8 }
  0x38   : > { %607 = shalt.err (!%p604_p1)
}
  0x39   : > { %s608_s22 = scalar_lea.vmem %s181_s6, 32  ;;  %s680_s17 = smov [#allocation6]  }
  0x3a   : > { %p609_p5 = scmp.ne.s32.totalorder %s181_s6, %s608_s22  ;;  %s613_s18 = sshll.u32 %s680_s17, 4  ;;  %s614_s18 = int_to_ptr.vmem [resolvable:$false] %s613_s18 }
  0x3b   : > { %s615_s19 = scalar_lea.vmem %s614_s18, 64  ;;  %p616_p7 = scmp.lt.s32.totalorder %s181_s6, %s614_s18 }
  0x3c   : > { %p611_p10 = pnand %p609_p5, %p565_p13  ;;  %p617_p6 = scmp.lt.s32.totalorder %s615_s19, %s608_s22 }
  0x3e   : > { %p612_p11 = pneg %p611_p10  ;;  %p618_p0 = por %p617_p6, %p616_p7 }
  0x40   : > { %p619_p12 = pnand %p618_p0, %p612_p11 }
  0x42   : > { %622 = shalt.err (!%p619_p12)
}
  0x43   : > { %505 = dma.hbm_to_vmem [thread:$0]  (!%p760_p9), %s807_s4, 32, %s181_s6, %s166_s27  }
  0x44   : > { %p884_p8 = scmp.ne.s32.totalorder %s883_s23, 0 }
  0x45   : > { %s191_s24 = sand.u32 (!%p884_p8), 1, %s661_s10   ;;  %p885_p13 = scmp.ne.s32.totalorder (!%p884_p8), %s879_s20, 0 }
  0x46   : > { %189 = sbr.rel (%p884_p8) target bundleno = 300 (0x12c), region = 28  ;;  %s487_s25 = sshll.u32 (!%p884_p8), %s191_s24, 3 }
  0x47   : > { %s192_s26 = scalar_lea.sflag (!%p884_p8), [#allocation5], %s191_s24  ;;  %s195_s28 = scalar_lea.vmem (!%p884_p8), [#allocation4], %s487_s25 }
  0x4d   : > { %648 = dma.done.wait (%p885_p13), %s192_s26, 128  }
  0x4e   : > { %650 = vsyncadd (%p885_p13), %s192_s26, 4294967168  ;;  %s488_s5 = sshll.u32 %s191_s24, 1  ;;  %s201_s29 = scalar_lea.sflag [#allocation7], %s191_s24 }
  0x4f   : > { %s836_s30 = scalar_lea.vmem [#allocation6], %s488_s5 }
  0x50   : > { %652 = dma.done.wait (%p885_p13), %s201_s29, 32  }
  0x51   : > { %654 = vsyncadd (%p885_p13), %s201_s29, 4294967264  ;;  %vm253_vm0 = vcmask 1043456   ;;  %v249_v0 = vld [vmem:[%s195_s28] sm:$0xff]  ;;  %v300_v26 = vlaneseq  ;;  %v299_v39 = vld [vmem:[%s836_s30] sm:$0x3]  ;;  %v681_v43 = vmov 0.0  }
  0x52   : > { %v251_v1 = vcombine.high %v249_v0, %v249_v0  ;;  %v254_v2 = vsel %vm253_vm0, %v249_v0, -inf  ;;  %p236_p7 = scmp.lt.s32.totalorder %s669_s12, 1  ;;  %vm355_vm3 = vcmask 7168   ;;  %vm357_vm4 = vcmask 11264  }
  0x53   : > { %v255_v3 = vrot.slane %v254_v2, 4  ;;  %v301_v31 = vshrl.u32 %v300_v26, 7 }
  0x54   : > { %v261_v4 = vsel %vm253_vm0, %v251_v1, -inf  ;;  %s894_s12 = smov (!%p236_p7, %s669_s12), 1 }
  0x55   : > { %v256_v5 = vmax.f32 %v254_v2, %v255_v3  ;;  %v262_v6 = vrot.slane %v261_v4, 4  ;;  %v304_v36 = vsub.s32 0, %v301_v31  ;;  %v308_v37 = vsub.s32 1, %v301_v31  ;;  %s489_s20 = sshll.u32 %s894_s12, 2 }
  0x56   : > { %s242_s6 = scalar_lea.vmem %s876_s2, %s489_s20 }
  0x57   : > { %v257_v7 = vrot.slane %v256_v5, 2  ;;  %v263_v8 = vmax.f32 %v261_v4, %v262_v6  ;;  %v305_v40 = vrot.slane %v299_v39, %v304_v36  ;;  %v309_v41 = vrot.slane %v299_v39, %v308_v37 }
  0x59   : > { %v258_v9 = vmax.f32 %v256_v5, %v257_v7  ;;  %v264_v10 = vrot.slane %v263_v8, 2  ;;  %vm310_vm1 = vcmp.eq.s32.totalorder %v305_v40, %v301_v31  ;;  %vm311_vm2 = vcmp.eq.s32.totalorder %v309_v41, %v301_v31 }
  0x5a   : > { %v325_v44 = vsel %vm310_vm1, 1.0, %v681_v43  ;;  %v326_v45 = vsel %vm311_vm2, 1.0, %v681_v43 }
  0x5b   : > { %v259_v11 = vrot.slane %v258_v9, 1  ;;  %v265_v12 = vmax.f32 %v263_v8, %v264_v10  ;;  %v329_v48 = vcombine.low %v325_v44, %v326_v45 }
  0x5d   : > { %v260_v13 = vmax.f32 %v258_v9, %v259_v11  ;;  %v266_v14 = vrot.slane %v265_v12, 1 }
  0x5f   : > { %v267_v15 = vmax.f32 %v265_v12, %v266_v14 }
  0x61   : > { %v270_v16 = vcombine.low %v260_v13, %v267_v15 }
  0x63   : > { %v272_v17 = vsub.f32 %v249_v0, %v270_v16 }
  0x65   : > { %v273_v18 = vmul.f32 1.442695, %v272_v17 }
  0x67   : > { %557 = vpow2.f32 %v273_v18 }
  0x71   : > { %v558_v19 = vpop.eup %557 }
  0x72   : > { %v276_v20 = vcombine.high %v558_v19, %v558_v19  ;;  %v278_v21 = vsel %vm253_vm0, %v558_v19, 0.0 }
  0x73   : > { %v279_v22 = vrot.slane %v278_v21, 4 }
  0x74   : > { %v285_v23 = vsel %vm253_vm0, %v276_v20, 0.0 }
  0x75   : > { %v280_v24 = vadd.f32 %v279_v22, %v278_v21  ;;  %v286_v25 = vrot.slane %v285_v23, 4 }
  0x77   : > { %v281_v27 = vrot.slane %v280_v24, 2  ;;  %v287_v28 = vadd.f32 %v286_v25, %v285_v23 }
  0x79   : > { %v282_v29 = vadd.f32 %v281_v27, %v280_v24  ;;  %v288_v30 = vrot.slane %v287_v28, 2 }
  0x7b   : > { %v283_v32 = vrot.slane %v282_v29, 1  ;;  %v289_v33 = vadd.f32 %v288_v30, %v287_v28 }
  0x7d   : > { %v284_v34 = vadd.f32 %v283_v32, %v282_v29  ;;  %v290_v35 = vrot.slane %v289_v33, 1 }
  0x7f   : > { %v291_v38 = vadd.f32 %v290_v35, %v289_v33  ;;  %559 = vrcp.f32 %v284_v34 }
  0x81   : > { %561 = vrcp.f32 %v291_v38 }
  0x89   : > { %v560_v42 = vpop.eup %559 }
  0x8b   : > { %v562_v46 = vpop.eup %561 }
  0x8c   : > { %v296_v47 = vcombine.low %v560_v42, %v562_v46 }
  0x8e   : > { %v298_v49 = vmul.f32 %v558_v19, %v296_v47 }
  0x90   : > { %v314_v50 = vcombine.high %v298_v49, %v298_v49  ;;  %v316_v51 = vsel %vm310_vm1, %v298_v49, 0.0  ;;  %v331_v52 = vadd.f32 %v329_v48, %v298_v49 }
  0x92   : > { %v317_v53 = vsel %vm311_vm2, %v314_v50, 0.0  ;;  %v348_v54 = vcombine.high %v331_v52, %v331_v52  ;;  %v350_v59 = vsel %vm253_vm0, %v331_v52, 0.0 }
  0x93   : > { %v320_v55 = vcombine.low %v316_v51, %v317_v53  ;;  %v494_v56 = vcombine.low %v317_v53, %v317_v53 }
  0x94   : > { %v351_v60 = vsel %vm253_vm0, %v348_v54, 0.0 }
  0x95   : > { %v341_v57 = vsel %vm253_vm0, %v320_v55, 0.0  ;;  %v342_v58 = vsel %vm253_vm0, %v494_v56, 0.0  ;;  %v352_v62 = vadd.f32 %v351_v60, %v350_v59 }
  0x96   : > { %v343_v61 = vadd.f32 %v342_v58, %v341_v57 }
  0x98   : > { %344 = vadd.xlane.f32.xlu0 %v343_v61 }
  0x9c   : > { %353 = vadd.xlane.f32.xlu0 %v352_v62 }
 0x125   : > { %v345_v63 = vpop.xlane.xlu0 %344 }
 0x129   : > { %v354_v0 = vpop.xlane.xlu0 %353 }
 0x12a   : > { %v356_v1 = vsel %vm355_vm3, %v345_v63, %v354_v0 }
 0x12b   : > { %358 = vst.msk [vmem:[%s242_s6] sm:$0xf] %vm357_vm4, %v356_v1 }
 0x12c PF: > { %s18_s14 = sadd.s32 1, %s677_s14   ;;  %s886_s9 = smov %s661_s10 }
 0x12d   : > { %p15_p9 = scmp.ge.s32.totalorder %s18_s14, 4   ;;  %s887_s10 = smov %s665_s11 }
 0x12e   : > { %s888_s11 = smov %s746_s21  ;;  %s889_s12 = smov %s673_s13 }
 0x12f   : > { %s890_s13 = smov %s892_s16  ;;  %17 = sbr.rel (!%p15_p9) target bundleno = 6 (0x6), region = 89 }
 0x136   :  { %384 = vsyncpa [#allocation5], 1 }
 0x137   :  { %386 = vsyncpa [#allocation5 + $0x1], 1 }
 0x138   :  { %387 = vsyncpa [#allocation7], 1 }
 0x139   :  { %389 = vsyncpa [#allocation7 + $0x1], 1 }

</bundles_post_ra>
